<compile_context>
chip_gen: v7x
topology: tpu7x:2x2x1
jax: 0.10.0
libtpu: 0.0.40
codegen_flags: <defaults>
</compile_context>

<pallas_src>
import jax
import jax.numpy as jnp
from jax.experimental import pallas as pl
from jax.experimental.pallas import tpu as pltpu


def _cdiv(a, b):
    return -(-a // b)


def _round_up(x, m):
    return _cdiv(x, m) * m


def _pick_tile(dim, target, align):
    """Balanced tile size <= ~target.

    If dim <= target the block simply equals the full array dim (always a
    legal block, regardless of (8, 128) alignment).  Otherwise the dim is
    split into cdiv(dim, target) near-equal, `align`-aligned tiles, which
    minimizes ragged/padded waste (e.g. K=576, target=512 -> tk=384, not 512).
    """
    if dim <= target:
        return dim
    n_tiles = _cdiv(dim, target)
    return _round_up(_cdiv(dim, n_tiles), align)


def _pick_vmem_limit(footprint_bytes):
    """Scoped-VMEM limit: generous headroom, capped by physical VMEM."""
    capacity = 64 * 1024 * 1024  # conservative fallback (v7x per-TC VMEM)
    try:
        info = pltpu.get_tpu_info()
        capacity = int(getattr(info, "vmem_capacity_bytes", capacity))
    except Exception:
        pass
    want = max(48 * 1024 * 1024, 2 * int(footprint_bytes) + 8 * 1024 * 1024)
    return int(max(32 * 1024 * 1024, min(want, capacity - 4 * 1024 * 1024)))


def _make_kernel(has_bias, use_scratch, compute_dtype, k_axis):
    """Build a GEMM kernel body for the given operand layout.

    Ref order: x, W, [bias], out, [acc scratch].  The reduction runs over the
    last grid axis (k_axis); the output block index is independent of k, so
    the accumulator (o_ref itself for f32 outputs) stays VMEM-resident.
    """

    def kernel(*refs):
        it = iter(refs)
        x_ref = next(it)
        w_ref = next(it)
        b_ref = next(it) if has_bias else None
        o_ref = next(it)
        acc_ref = next(it) if use_scratch else o_ref

        k = pl.program_id(k_axis)
        nk = pl.num_programs(k_axis)

        @pl.when(k == 0)
        def _init():
            acc_ref[...] = jnp.zeros_like(acc_ref)

        xt = x_ref[...]
        wt = w_ref[...]
        if compute_dtype is not None:
            xt = xt.astype(compute_dtype)
            wt = wt.astype(compute_dtype)
        # MXU matmul (bf16 operands by default) with f32 accumulation.
        acc_ref[...] += jnp.dot(xt, wt, preferred_element_type=jnp.float32)

        if has_bias or use_scratch:
            @pl.when(k == nk - 1)
            def _finalize():
                out = acc_ref[...]
                if has_bias:
                    out = out + b_ref[...].astype(jnp.float32)
                o_ref[...] = out.astype(o_ref.dtype)

    return kernel


def my_linear(x, W, b=None, *, tm=512, tn=512, tk=1024,
              compute_dtype=jnp.bfloat16):
    """Forward pass of MyLinear: x @ W + b[None] (or x @ W if b is None).

    compute_dtype: dtype fed to the MXU (accumulation is always f32).
    Default bf16 trades ~1e-2 relative accuracy for 2-4x MXU throughput;
    pass None to matmul in the input dtype.
    """
    orig_shape = x.shape
    K = orig_shape[-1]
    assert W.ndim == 2 and W.shape[0] == K, "x.shape[-1] must match W.shape[0]"
    N = W.shape[1]

    x2 = x.reshape(-1, K)          # flatten any leading batch dims
    M = x2.shape[0]

    out_dtype = x.dtype
    has_bias = b is not None
    # f32 outputs accumulate directly into o_ref; otherwise use an f32 scratch.
    use_scratch = jnp.dtype(out_dtype) != jnp.dtype(jnp.float32)

    skinny = M <= 256              # decode/small-batch style shapes

    # ---- tile selection ---------------------------------------------------
    tm_b = M if skinny else _pick_tile(M, tm, 8)
    tn_b = _pick_tile(N, tn, 128)
    tk_b = _pick_tile(K, tk, 128)

    # Give both v7x TensorCores work: make sure the "parallel" grid axes
    # split into >= 2 tiles when the problem allows it (neutral on v5e/v6e).
    if skinny:
        if _cdiv(N, tn_b) < 2 and N > 128:
            tn_b = max(128, _round_up(_cdiv(N, 2), 128))
    else:
        if _cdiv(M, tm_b) * _cdiv(N, tn_b) < 2:
            if N > 128:
                tn_b = max(128, _round_up(_cdiv(N, 2), 128))
            elif M > 8:
                tm_b = max(8, _round_up(_cdiv(M, 2), 8))

    # ---- only K needs zero-padding (it feeds the reduction) ----------------
    Kp = _round_up(K, tk_b)
    xp = x2 if Kp == K else jnp.pad(x2, ((0, 0), (0, Kp - K)))
    Wp = W if Kp == K else jnp.pad(W, ((0, Kp - K), (0, 0)))
    grid_k = Kp // tk_b

    # ---- grid / specs -------------------------------------------------------
    if skinny:
        # 2-D (N, K) grid: whole x block resident, W streamed from HBM once.
        grid = (_cdiv(N, tn_b), grid_k)
        k_axis = 1
        x_spec = pl.BlockSpec((tm_b, tk_b), lambda j, k: (0, k))
        w_spec = pl.BlockSpec((tk_b, tn_b), lambda j, k: (k, j))
        b_spec = pl.BlockSpec((1, tn_b), lambda j, k: (0, j))
        o_spec = pl.BlockSpec((tm_b, tn_b), lambda j, k: (0, j))
        semantics = ("parallel", "arbitrary")
    else:
        grid = (_cdiv(M, tm_b), _cdiv(N, tn_b), grid_k)
        k_axis = 2
        x_spec = pl.BlockSpec((tm_b, tk_b), lambda i, j, k: (i, k))
        w_spec = pl.BlockSpec((tk_b, tn_b), lambda i, j, k: (k, j))
        b_spec = pl.BlockSpec((1, tn_b), lambda i, j, k: (0, j))
        o_spec = pl.BlockSpec((tm_b, tn_b), lambda i, j, k: (i, j))
        semantics = ("parallel", "parallel", "arbitrary")

    in_specs = [x_spec, w_spec]
    operands = [xp, Wp]
    if has_bias:
        in_specs.append(b_spec)
        operands.append(jnp.asarray(b).reshape(1, N))

    scratch_shapes = (
        [pltpu.VMEM((tm_b, tn_b), jnp.float32)] if use_scratch else []
    )

    # ---- VMEM footprint estimate (double-buffered ins/outs + scratch) ------
    x_it = jnp.dtype(xp.dtype).itemsize
    w_it = jnp.dtype(Wp.dtype).itemsize
    o_it = jnp.dtype(out_dtype).itemsize
    footprint = 2 * (tm_b * tk_b * x_it + tk_b * tn_b * w_it) \
        + 2 * tm_b * tn_b * o_it
    if has_bias:
        footprint += 2 * tn_b * jnp.dtype(jnp.asarray(b).dtype).itemsize
    if use_scratch:
        footprint += tm_b * tn_b * 4

    kernel = _make_kernel(has_bias, use_scratch, compute_dtype, k_axis)

    out = pl.pallas_call(
        kernel,
        out_shape=jax.ShapeDtypeStruct((M, N), out_dtype),
        grid_spec=pltpu.PrefetchScalarGridSpec(
            num_scalar_prefetch=0,
            grid=grid,
            in_specs=in_specs,
            out_specs=o_spec,
            scratch_shapes=scratch_shapes,
        ),
        compiler_params=pltpu.CompilerParams(
            dimension_semantics=semantics,
            vmem_limit_bytes=_pick_vmem_limit(footprint),
        ),
    )(*operands)

    return out.reshape(orig_shape[:-1] + (N,))


def kaiming_normal_init(key, in_dim, out_dim, nonlinearity="sigmoid"):
    # Replicates torch.nn.init.kaiming_normal_ applied to the (in_dim, out_dim)
    # parameter exactly as the PyTorch module does: for a 2-D tensor torch uses
    # fan_in = tensor.size(1) = out_dim, gain('sigmoid') = 1.
    gain = 1.0
    fan_in = out_dim
    std = gain / jnp.sqrt(jnp.float32(fan_in))
    return jax.random.normal(key, (in_dim, out_dim), dtype=jnp.float32) * std


if __name__ == "__main__":
    # --- demo at the module's natural small shapes (skinny-M fast path) ----
    batch, in_dim, out_dim = 8, 32, 128

    key = jax.random.PRNGKey(0)
    kx, kw = jax.random.split(key)

    x = jax.random.normal(kx, (batch, in_dim), dtype=jnp.float32)
    W = kaiming_normal_init(kw, in_dim, out_dim)   # nn.Parameter + kaiming init
    b = jnp.zeros((out_dim,), dtype=jnp.float32)   # nn.Parameter(torch.zeros)

    out = my_linear(x, W, b)
    jax.block_until_ready(out)

    # Reference with the same bf16-MXU / f32-accumulate semantics, plus a
    # loose check against the pure-f32 reference (documents the bf16 tradeoff).
    xb, Wb = x.astype(jnp.bfloat16), W.astype(jnp.bfloat16)
    ref_bf16 = jnp.dot(xb, Wb, preferred_element_type=jnp.float32) + b[None]
    ref_f32 = x @ W + b[None]
    assert out.shape == (batch, out_dim)
    assert jnp.allclose(out, ref_bf16, atol=1e-2, rtol=1e-2)
    assert jnp.allclose(out, ref_f32, atol=5e-2, rtol=5e-2)

    # --- bias=False path (no bias operand at all) ---------------------------
    out_nb = my_linear(x, W, None)
    jax.block_until_ready(out_nb)
    ref_nb = jnp.dot(xb, Wb, preferred_element_type=jnp.float32)
    assert jnp.allclose(out_nb, ref_nb, atol=1e-2, rtol=1e-2)

    # --- general 3-D grid path: ragged M/N edge blocks + zero-padded K ------
    M2, K2, N2 = 300, 576, 384
    k1, k2 = jax.random.split(jax.random.PRNGKey(1))
    x2 = jax.random.normal(k1, (M2, K2), dtype=jnp.float32)
    W2 = jax.random.normal(k2, (K2, N2), dtype=jnp.float32) / jnp.sqrt(
        jnp.float32(K2))
    b2 = jax.random.normal(jax.random.PRNGKey(2), (N2,), dtype=jnp.float32)

    out2 = my_linear(x2, W2, b2, tm=128, tn=256, tk=256)
    jax.block_until_ready(out2)
    ref2 = jnp.dot(x2.astype(jnp.bfloat16), W2.astype(jnp.bfloat16),
                   preferred_element_type=jnp.float32) + b2[None]
    assert out2.shape == (M2, N2)
    assert jnp.allclose(out2, ref2, atol=2e-2, rtol=2e-2)

    print("KERNEL_OK")
</pallas_src>

<mosaic_0001>
module attributes {stable_mosaic.version = 11 : i64} {
  func.func @kernel(%arg0: i32, %arg1: i32, %arg2: memref<8x32xf32, #tpu.memory_space<vmem>>, %arg3: memref<32x128xf32, #tpu.memory_space<vmem>>, %arg4: memref<1x128xf32, #tpu.memory_space<vmem>>, %arg5: memref<8x128xf32, #tpu.memory_space<vmem>>) attributes {dimension_semantics = [#tpu.dimension_semantics<parallel>, #tpu.dimension_semantics<arbitrary>], iteration_bounds = array<i64: 1, 1>, scalar_prefetch = 0 : i64, scratch_operands = 0 : i64, tpu.core_type = #tpu.core_type<tc>, window_params = [{transform_indices = @transform_0, window_bounds = array<i64: 8, 32>}, {transform_indices = @transform_1, window_bounds = array<i64: 32, 128>}, {transform_indices = @transform_2, window_bounds = array<i64: 1, 128>}, {transform_indices = @transform_3, window_bounds = array<i64: 8, 128>}]} {
    %c0_i32 = arith.constant 0 : i32
    %0 = arith.cmpi eq, %arg1, %c0_i32 : i32
    %1 = arith.extui %0 : i1 to i32
    %c0_i32_0 = arith.constant 0 : i32
    %2 = arith.cmpi ne, %1, %c0_i32_0 : i32
    scf.if %2 {
      %cst_10 = arith.constant 0.000000e+00 : f32
      %14 = vector.broadcast %cst_10 : f32 to vector<8x128xf32>
      %c0_11 = arith.constant 0 : index
      %c0_12 = arith.constant 0 : index
      %15 = vector.load %arg5[%c0_11, %c0_12] : memref<8x128xf32, #tpu.memory_space<vmem>>, vector<8x128xf32>
      tpu.vector_store %arg5[%c0_11, %c0_12], %14 {strides = array<i32>} : memref<8x128xf32, #tpu.memory_space<vmem>>, vector<8x128xf32>,
    } else {
    }
    %c0 = arith.constant 0 : index
    %c0_1 = arith.constant 0 : index
    %3 = vector.load %arg2[%c0, %c0_1] : memref<8x32xf32, #tpu.memory_space<vmem>>, vector<8x32xf32>
    %c0_2 = arith.constant 0 : index
    %c0_3 = arith.constant 0 : index
    %4 = vector.load %arg3[%c0_2, %c0_3] : memref<32x128xf32, #tpu.memory_space<vmem>>, vector<32x128xf32>
    %5 = arith.truncf %3 : vector<8x32xf32> to vector<8x32xbf16>
    %6 = arith.truncf %4 : vector<32x128xf32> to vector<32x128xbf16>
    %c0_4 = arith.constant 0 : index
    %c0_5 = arith.constant 0 : index
    %7 = vector.load %arg5[%c0_4, %c0_5] : memref<8x128xf32, #tpu.memory_space<vmem>>, vector<8x128xf32>
    %cst = arith.constant dense<0.000000e+00> : vector<8x128xf32>
    %8 = tpu.matmul %5, %6, %cst {dimension_numbers = #tpu.dot_dimension_numbers<[1], [0], [0], [1], [0, 0, 1, 1], [], []>} : vector<8x32xbf16>, vector<32x128xbf16>, vector<8x128xf32> -> vector<8x128xf32>
    %9 = arith.addf %7, %8 : vector<8x128xf32>
    %c0_6 = arith.constant 0 : index
    %c0_7 = arith.constant 0 : index
    %10 = vector.load %arg5[%c0_6, %c0_7] : memref<8x128xf32, #tpu.memory_space<vmem>>, vector<8x128xf32>
    tpu.vector_store %arg5[%c0_6, %c0_7], %9 {strides = array<i32>} : memref<8x128xf32, #tpu.memory_space<vmem>>, vector<8x128xf32>,
    %c0_i32_8 = arith.constant 0 : i32
    %11 = arith.cmpi eq, %arg1, %c0_i32_8 : i32
    %12 = arith.extui %11 : i1 to i32
    %c0_i32_9 = arith.constant 0 : i32
    %13 = arith.cmpi ne, %12, %c0_i32_9 : i32
    scf.if %13 {
      %c0_10 = arith.constant 0 : index
      %c0_11 = arith.constant 0 : index
      %14 = vector.load %arg5[%c0_10, %c0_11] : memref<8x128xf32, #tpu.memory_space<vmem>>, vector<8x128xf32>
      %c0_12 = arith.constant 0 : index
      %c0_13 = arith.constant 0 : index
      %15 = vector.load %arg4[%c0_12, %c0_13] : memref<1x128xf32, #tpu.memory_space<vmem>>, vector<1x128xf32>
      %16 = vector.broadcast %15 : vector<1x128xf32> to vector<8x128xf32>
      %17 = arith.addf %14, %16 : vector<8x128xf32>
      %c0_14 = arith.constant 0 : index
      %c0_15 = arith.constant 0 : index
      %18 = vector.load %arg5[%c0_14, %c0_15] : memref<8x128xf32, #tpu.memory_space<vmem>>, vector<8x128xf32>
      tpu.vector_store %arg5[%c0_14, %c0_15], %17 {strides = array<i32>} : memref<8x128xf32, #tpu.memory_space<vmem>>, vector<8x128xf32>,
    } else {
    }
    return
  }
  func.func @transform_0(%arg0: i32, %arg1: i32) -> (i32, i32) {
    %c0_i32 = arith.constant 0 : i32
    %c0_i32_0 = arith.constant 0 : i32
    return %c0_i32, %arg1 : i32, i32
  }
  func.func @transform_1(%arg0: i32, %arg1: i32) -> (i32, i32) {
    %c0_i32 = arith.constant 0 : i32
    return %arg1, %arg0 : i32, i32
  }
  func.func @transform_2(%arg0: i32, %arg1: i32) -> (i32, i32) {
    %c0_i32 = arith.constant 0 : i32
    %c0_i32_0 = arith.constant 0 : i32
    return %c0_i32, %arg0 : i32, i32
  }
  func.func @transform_3(%arg0: i32, %arg1: i32) -> (i32, i32) {
    %c0_i32 = arith.constant 0 : i32
    %c0_i32_0 = arith.constant 0 : i32
    return %c0_i32, %arg0 : i32, i32
  }
}

</mosaic_0001>

<bundles_post_ra>
// kernel: tpu_custom_call.1
= control target key start
LH: loop header
LB: loop body
LE: loop exit
PB: predicated region body
PF: predicated region fallthrough
CT: control target
= control target key end

     0   :  { %8 = vsyncpa [#allocation3], 0  ;;  %s296_s0 = inlined_call_operand.hbm [shape: f32[8,32], index: 0, kind: input, shape index: {}]   ;;  %s297_s1 = inlined_call_operand.hbm [shape: f32[32,128], index: 1, kind: input, shape index: {}]   ;;  %s298_s2 = inlined_call_operand.vmem [shape: f32[1,128], index: 2, kind: input, shape index: {}]   ;;  %s299_s3 = inlined_call_operand.hbm [shape: f32[8,128], index: 3, kind: output, shape index: {}]  }
   0x1   :  { %9 = vsyncpa [#allocation6], 0 }
   0x2   :  { %10 = vsyncpa [#allocation4], 0  ;;  %s223_s12 = smov [#allocation2]   ;;  %s224_s14 = smov [#allocation5]  }
   0x3   :  { %s17_s13 = sshll.u32 %s223_s12, 4  ;;  %s26_s15 = sshll.u32 %s224_s14, 4  ;;  %s18_s13 = int_to_ptr.vmem [resolvable:$true] %s17_s13  ;;  %s250_s15 = int_to_ptr.vmem [resolvable:$true] %s26_s15 }
   0x4   :  { %s151_s18 = scalar_lea.hbm %s296_s0, 128 }
   0x5   :  { %p152_p0 = scmp.ne.s32.totalorder %s296_s0, %s151_s18  ;;  %p155_p1 = scmp.lt.u32.totalorder %s151_s18, %s296_s0 }
   0x7   :  { %p157_p2 = pnand %p155_p1, %p152_p0 }
   0x9   :  { %160 = shalt.err (!%p157_p2)
}
   0xa   :  { %s161_s23 = scalar_lea.vmem %s18_s13, 128  ;;  %p166_p4 = scmp.lt.s32.totalorder %s18_s13, %s18_s13 }
   0xb   :  { %p162_p3 = scmp.ne.s32.totalorder %s18_s13, %s161_s23  ;;  %p167_p5 = scmp.lt.s32.totalorder %s161_s23, %s161_s23 }
   0xd   :  { %p168_p6 = por %p167_p5, %p166_p4 }
   0xf   :  { %p169_p7 = pnand %p168_p6, %p162_p3 }
  0x11   :  { %172 = shalt.err (!%p169_p7)
}
  0x12   :  { %20 = dma.hbm_to_vmem [thread:$0]  %s296_s0, 128, %s18_s13, [#allocation3]  }
  0x13   :  { %s173_s28 = scalar_lea.hbm %s297_s1, 512 }
  0x14   :  { %p174_p8 = scmp.ne.s32.totalorder %s297_s1, %s173_s28  ;;  %p177_p9 = scmp.lt.u32.totalorder %s173_s28, %s297_s1 }
  0x16   :  { %p179_p10 = pnand %p177_p9, %p174_p8 }
  0x18   :  { %182 = shalt.err (!%p179_p10)
}
  0x19   :  { %s183_s6 = scalar_lea.vmem %s250_s15, 512  ;;  %p188_p12 = scmp.lt.s32.totalorder %s250_s15, %s250_s15 }
  0x1a   :  { %p184_p11 = scmp.ne.s32.totalorder %s250_s15, %s183_s6  ;;  %p189_p13 = scmp.lt.s32.totalorder %s183_s6, %s183_s6 }
  0x1c   :  { %p190_p0 = por %p189_p13, %p188_p12 }
  0x1e   :  { %p191_p1 = pnand %p190_p0, %p184_p11 }
  0x20   :  { %194 = shalt.err (!%p191_p1)
}
  0x21   :  { %s225_s0 = smov 128   ;;  %s226_s7 = smov 8  }
  0x22   :  { %32 = dma.hbm_to_vmem [thread:$0]  %s297_s1, 512, %s250_s15, [#allocation6], %s225_s0, %s225_s0, %s226_s7  }
  0x23   :  { %217 = dma.done.wait [#allocation3], 128  }
  0x24   :  { %218 = vsyncadd [#allocation3], 4294967168 }
  0x25   :  { %219 = dma.done.wait [#allocation6], 512  }
  0x26   :  { %220 = vsyncadd [#allocation6], 4294966784  ;;  %v227_v0 = vmov 0.0   ;;  %vm228_vm0 = vmmov 0   ;;  %v48_v1 = vld [vmem:[#allocation5] sm:$0xff]  ;;  %v49_v2 = vld [vmem:[#allocation5 + $0x8] sm:$0xff] }
  0x27   :  { %136 = vmatprep.subr.bf16.mxu0 %v227_v0  ;;  %140 = vmatprep.mubr.msk.bf16.mxu0 %vm228_vm0, %v227_v0  ;;  %v50_v3 = vld [vmem:[#allocation5 + $0x10] sm:$0xff]  ;;  %v53_v4 = vpack.c.bf16 %v49_v2, %v48_v1  ;;  %v51_v5 = vld [vmem:[#allocation5 + $0x18] sm:$0xff]  ;;  %vm56_vm1 = vcmask 261120   ;;  %s229_s11 = smov [#allocation7]  }
  0x28   :  { %v54_v6 = vpack.c.bf16 %v51_v5, %v50_v3  ;;  %v47_v7 = vld [vmem:[#allocation2] sm:$0xff]  ;;  %s121_s12 = sshll.u32 %s229_s11, 4  ;;  %s122_s12 = int_to_ptr.vmem [resolvable:$true] %s121_s12 }
  0x29   :  { %137 = vmatpush3.bf16.msra.mxu0 %v53_v4  ;;  %v52_v8 = vpack.c.bf16 %v47_v7, %v47_v7  ;;  %v132_v10 = vld [vmem:[%s298_s2] ss:$0 sm:$0xff]  ;;  %s195_s13 = scalar_lea.vmem %s122_s12, 128  ;;  %p200_p3 = scmp.lt.s32.totalorder %s122_s12, %s122_s12 }
  0x2a   :  { %138 = vmatprep.subr.bf16.mxu0 %v227_v0  ;;  %p196_p2 = scmp.ne.s32.totalorder %s122_s12, %s195_s13  ;;  %p201_p4 = scmp.lt.s32.totalorder %s195_s13, %s195_s13 }
  0x2c   :  { %p202_p5 = por %p201_p4, %p200_p3 }
  0x2d   :  { %139 = vmatpush3.bf16.msra.mxu0 %v54_v6 }
  0x2e   :  { %p203_p6 = pnand %p202_p5, %p196_p2 }
  0x30   :  { %141 = vmatmul.mubr.msk.bf16.vlgmr.msra.gmra.mrb[0].mxu0 %vm56_vm1, %v52_v8 }
 0x103   :  { %v94_v9 = vpop.f32.mrb[0].mxu0 }
 0x104   :  { %v142_v11 = vpop.f32.mrb[1].mxu0  ;;  %v113_v14 = vadd.f32 %v132_v10, %v94_v9 }
 0x105   :  { %v97_v12 = vpop.f32.mrb[2].mxu0 }
 0x106   :  { %v143_v13 = vpop.f32.mrb[3].mxu0  ;;  %114 = vst [vmem:[#allocation7] sm:$0xff] %v113_v14 }
 0x107   :  { %206 = shalt.err (!%p203_p6)
}
 0x108   :  { %s207_s16 = scalar_lea.hbm %s299_s3, 128 }
 0x109   :  { %p208_p7 = scmp.ne.s32.totalorder %s299_s3, %s207_s16  ;;  %p211_p8 = scmp.lt.u32.totalorder %s207_s16, %s299_s3 }
 0x10b   :  { %p213_p9 = pnand %p211_p8, %p208_p7 }
 0x10d   :  { %216 = shalt.err (!%p213_p9)
}
 0x10e   :  { %124 = dma.vmem_to_hbm [thread:$0]  %s122_s12, 128, %s299_s3, [#allocation4]  }
 0x10f   :  { %221 = dma.done.wait [#allocation4], 128  }
 0x110   :  { %222 = vsyncadd [#allocation4], 4294967168 }
 0x111   :  { %128 = vsyncpa [#allocation3], 1 }
 0x112   :  { %129 = vsyncpa [#allocation6], 1 }
 0x113   :  { %130 = vsyncpa [#allocation4], 1 }

</bundles_post_ra>
